<compile_context>
chip_gen: v7x
topology: tpu7x:2x2x1
jax: 0.10.0
libtpu: 0.0.40
codegen_flags: <defaults>
</compile_context>

<pallas_src>
import functools

import jax
import jax.numpy as jnp
from jax.experimental import pallas as pl
from jax.experimental.pallas import tpu as pltpu


# ----------------------------- Pallas kernel ------------------------------ #

def qnet_kernel(obs_ref, act_ref, slab_ref, q_ref, *, obs_dim, n_act, H, offs):
    """Both Q heads, all layers, in one body (batch tile = current grid step)."""
    H2 = 2 * H
    obs = obs_ref[...]                                      # (TB, obs_dim)
    act = act_ref[...]                                      # (TB, n_act)

    # Static slices into the packed parameter slab (zero runtime cost).
    w0  = slab_ref[offs["w0"]:offs["w0"] + obs_dim, :]      # (obs_dim, 2H)
    w1f = slab_ref[offs["w1f"]:offs["w1f"] + H2, :]         # (2H, 2H) block-diag
    w1a = slab_ref[offs["w1a"]:offs["w1a"] + n_act, :]      # (n_act, 2H)
    w2  = slab_ref[offs["w2"]:offs["w2"] + H2, :]           # (2H, 2H) block-diag
    ob  = offs["bias"]
    b0     = slab_ref[ob + 0:ob + 1, :]                     # (1, 2H)
    b1     = slab_ref[ob + 1:ob + 2, :]                     # (1, 2H)
    b2     = slab_ref[ob + 2:ob + 3, :]                     # (1, 2H)
    w3row  = slab_ref[ob + 3:ob + 4, :]                     # (1, 2H)
    b3pair = slab_ref[ob + 4:ob + 5, 0:2]                   # (1, 2)

    # Fused feature extractor for both heads: ReLU(obs @ [W0_1 | W0_2] + b0).
    feat = jnp.maximum(
        jnp.dot(obs, w0, preferred_element_type=jnp.float32) + b0, 0.0)

    # mlp[0]: ReLU(concat([feature, action], 1) @ W1 + b1) as a split matmul.
    h1 = jnp.maximum(
        jnp.dot(feat, w1f, preferred_element_type=jnp.float32)
        + jnp.dot(act, w1a, preferred_element_type=jnp.float32) + b1, 0.0)

    # mlp[2]: ReLU(h1 @ W2 + b2).
    h2 = jnp.maximum(
        jnp.dot(h1, w2, preferred_element_type=jnp.float32) + b2, 0.0)

    # fc head: the 1-wide matmul is done on the VPU/XLU (multiply + lane sum).
    prod = h2 * w3row                                       # (TB, 2H)
    q1 = jnp.sum(prod[:, :H], axis=-1, keepdims=True)       # (TB, 1) head 1
    q2 = jnp.sum(prod[:, H:], axis=-1, keepdims=True)       # (TB, 1) head 2
    q_ref[...] = jnp.concatenate([q1, q2], axis=-1) + b3pair  # (TB, 2)


# ------------------------------ JAX wrapper -------------------------------- #

def double_qnet_forward(obs, action, slab, layout, *, batch_block=512):
    """Single pallas_call over a batch grid; params resident across tiles."""
    B, obs_dim = obs.shape
    _, n_act = action.shape
    H = layout["H"]
    H2 = 2 * H
    R = slab.shape[0]
    assert obs_dim == layout["obs_dim"] and n_act == layout["n_act"]

    if B <= batch_block:
        TB = B                              # single (full) batch tile
    else:
        assert batch_block % 8 == 0
        TB = batch_block
    nb = pl.cdiv(B, TB)

    kernel = functools.partial(qnet_kernel, obs_dim=obs_dim, n_act=n_act,
                               H=H, offs=layout["offsets"])

    out = pl.pallas_call(
        kernel,
        out_shape=jax.ShapeDtypeStruct((B, 2), jnp.float32),
        grid=(nb,),
        in_specs=[
            pl.BlockSpec((TB, obs_dim), lambda i: (i, 0)),   # obs, batch-tiled
            pl.BlockSpec((TB, n_act), lambda i: (i, 0)),     # action, batch-tiled
            pl.BlockSpec((R, H2), lambda i: (0, 0)),         # param slab: resident
        ],
        out_specs=pl.BlockSpec((TB, 2), lambda i: (i, 0)),   # lane-dense (B, 2)
        compiler_params=pltpu.CompilerParams(
            dimension_semantics=("parallel",)),              # megacore on v7x
    )(obs, action, slab)

    return out[:, 0], out[:, 1]


# --------------------------- parameter handling ---------------------------- #

def init_params(key, obs_dim, n_act, hidden):
    """Per-head parameters (leading axis = 2), mirroring the PyTorch module."""
    def lin(k, fan_in, shape):
        # PyTorch nn.Linear default: U(-1/sqrt(fan_in), 1/sqrt(fan_in))
        bound = 1.0 / jnp.sqrt(jnp.float32(fan_in))
        return jax.random.uniform(k, shape, jnp.float32, -bound, bound)

    ks = jax.random.split(key, 16)
    H = hidden
    return {
        # feature extractor: Linear(obs_dim, H)
        "w0":  lin(ks[0], obs_dim, (2, obs_dim, H)),
        "b0":  lin(ks[1], obs_dim, (2, 1, H)),
        # mlp[0]: Linear(H + n_act, H), stored split into [feature | action] rows
        "w1f": lin(ks[2], H + n_act, (2, H, H)),
        "w1a": lin(ks[3], H + n_act, (2, n_act, H)),
        "b1":  lin(ks[4], H + n_act, (2, 1, H)),
        # mlp[2]: Linear(H, H)
        "w2":  lin(ks[5], H, (2, H, H)),
        "b2":  lin(ks[6], H, (2, 1, H)),
        # fc: Linear(H, 1)
        "w3":  lin(ks[7], H, (2, H, 1)),
        "b3":  lin(ks[8], H, (2, 1, 1)),
    }


def pack_params(params):
    """Fuse the two Q heads and pack everything into one (R, 2H) fp32 slab."""
    _, obs_dim, H = params["w0"].shape
    n_act = params["w1a"].shape[1]
    H2 = 2 * H
    dt = params["w0"].dtype

    def cat_out(p):                       # concat heads along the output axis
        return jnp.concatenate([p[0], p[1]], axis=-1)

    def block_diag(p):                    # (2, H, H) -> (2H, 2H)
        z = jnp.zeros((H, H), dt)
        return jnp.concatenate(
            [jnp.concatenate([p[0], z], axis=1),
             jnp.concatenate([z, p[1]], axis=1)], axis=0)

    w0_cat  = cat_out(params["w0"])                          # (obs_dim, 2H)
    w1f_bd  = block_diag(params["w1f"])                      # (2H, 2H)
    w1a_cat = cat_out(params["w1a"])                         # (n_act, 2H)
    w2_bd   = block_diag(params["w2"])                       # (2H, 2H)

    b0_cat = cat_out(params["b0"])                           # (1, 2H)
    b1_cat = cat_out(params["b1"])                           # (1, 2H)
    b2_cat = cat_out(params["b2"])                           # (1, 2H)
    w3_row = jnp.concatenate([params["w3"][0][:, 0],
                              params["w3"][1][:, 0]])[None, :]   # (1, 2H)
    b3_pair = jnp.concatenate([params["b3"][0], params["b3"][1]], axis=-1)  # (1, 2)
    b3_row = jnp.pad(b3_pair, ((0, 0), (0, H2 - 2)))         # (1, 2H), cols 0,1
    bias_blk = jnp.concatenate([b0_cat, b1_cat, b2_cat, w3_row, b3_row], axis=0)

    def pad8(x):                         # sublane-align every section start
        pad = (-x.shape[0]) % 8
        return jnp.pad(x, ((0, pad), (0, 0))) if pad else x

    sections = {"w0": w0_cat, "w1f": w1f_bd, "w1a": w1a_cat,
                "w2": w2_bd, "bias": bias_blk}
    offs, chunks, row = {}, [], 0
    for name, sec in sections.items():
        sec = pad8(sec)
        offs[name] = row
        row += sec.shape[0]
        chunks.append(sec)
    slab = jnp.concatenate(chunks, axis=0)                   # (R, 2H)
    layout = {"H": H, "obs_dim": obs_dim, "n_act": n_act, "offsets": offs}
    return slab, layout


def reference_forward(obs, action, params):
    """Pure-JAX reference of the PyTorch forward, for correctness checking."""
    def one(q):
        feat = jnp.maximum(obs @ params["w0"][q] + params["b0"][q], 0.0)
        x = jnp.concatenate([feat, action], axis=1)
        w1 = jnp.concatenate([params["w1f"][q], params["w1a"][q]], axis=0)
        h1 = jnp.maximum(x @ w1 + params["b1"][q], 0.0)
        h2 = jnp.maximum(h1 @ params["w2"][q] + params["b2"][q], 0.0)
        return (h2 @ params["w3"][q] + params["b3"][q])[:, 0]
    return one(0), one(1)


# ---------------------------------- main ----------------------------------- #

if __name__ == "__main__":
    B, OBS_DIM, N_ACT, HIDDEN = 8, 16, 4, 32

    key = jax.random.PRNGKey(0)
    k_obs, k_act, k_par = jax.random.split(key, 3)

    obs = jax.random.normal(k_obs, (B, OBS_DIM), jnp.float32)
    action = jax.random.normal(k_act, (B, N_ACT), jnp.float32)
    params = init_params(k_par, OBS_DIM, N_ACT, HIDDEN)
    slab, layout = pack_params(params)

    q1, q2 = double_qnet_forward(obs, action, slab, layout)
    jax.block_until_ready((q1, q2))

    r1, r2 = reference_forward(obs, action, params)
    assert q1.shape == (B,) and q2.shape == (B,)
    assert jnp.allclose(q1, r1, atol=1e-5, rtol=1e-5)
    assert jnp.allclose(q2, r2, atol=1e-5, rtol=1e-5)

    print("KERNEL_OK")
</pallas_src>

<mosaic_0001>
module attributes {stable_mosaic.version = 11 : i64} {
  func.func @qnet_kernel(%arg0: i32, %arg1: memref<8x16xf32, #tpu.memory_space<vmem>>, %arg2: memref<8x4xf32, #tpu.memory_space<vmem>>, %arg3: memref<160x64xf32, #tpu.memory_space<vmem>>, %arg4: memref<8x2xf32, #tpu.memory_space<vmem>>) attributes {dimension_semantics = [#tpu.dimension_semantics<parallel>], iteration_bounds = array<i64: 1>, scalar_prefetch = 0 : i64, scratch_operands = 0 : i64, tpu.core_type = #tpu.core_type<tc>, window_params = [{transform_indices = @transform_0, window_bounds = array<i64: 8, 16>}, {transform_indices = @transform_1, window_bounds = array<i64: 8, 4>}, {pipeline_mode = #tpu.pipeline_mode<synchronous>, transform_indices = @transform_2, window_bounds = array<i64: 160, 64>}, {transform_indices = @transform_3, window_bounds = array<i64: 8, 2>}]} {
    %c0 = arith.constant 0 : index
    %c0_0 = arith.constant 0 : index
    %0 = vector.load %arg1[%c0, %c0_0] : memref<8x16xf32, #tpu.memory_space<vmem>>, vector<8x16xf32>
    %c0_1 = arith.constant 0 : index
    %c0_2 = arith.constant 0 : index
    %1 = vector.load %arg2[%c0_1, %c0_2] : memref<8x4xf32, #tpu.memory_space<vmem>>, vector<8x4xf32>
    %c0_3 = arith.constant 0 : index
    %c0_4 = arith.constant 0 : index
    %2 = vector.load %arg3[%c0_3, %c0_4] : memref<160x64xf32, #tpu.memory_space<vmem>>, vector<16x64xf32>
    %c16 = arith.constant 16 : index
    %c0_5 = arith.constant 0 : index
    %3 = vector.load %arg3[%c16, %c0_5] : memref<160x64xf32, #tpu.memory_space<vmem>>, vector<64x64xf32>
    %c80 = arith.constant 80 : index
    %c0_6 = arith.constant 0 : index
    %4 = vector.load %arg3[%c80, %c0_6] : memref<160x64xf32, #tpu.memory_space<vmem>>, vector<4x64xf32>
    %c88 = arith.constant 88 : index
    %c0_7 = arith.constant 0 : index
    %5 = vector.load %arg3[%c88, %c0_7] : memref<160x64xf32, #tpu.memory_space<vmem>>, vector<64x64xf32>
    %c152 = arith.constant 152 : index
    %c0_8 = arith.constant 0 : index
    %6 = vector.load %arg3[%c152, %c0_8] : memref<160x64xf32, #tpu.memory_space<vmem>>, vector<1x64xf32>
    %c153 = arith.constant 153 : index
    %c0_9 = arith.constant 0 : index
    %7 = vector.load %arg3[%c153, %c0_9] : memref<160x64xf32, #tpu.memory_space<vmem>>, vector<1x64xf32>
    %c154 = arith.constant 154 : index
    %c0_10 = arith.constant 0 : index
    %8 = vector.load %arg3[%c154, %c0_10] : memref<160x64xf32, #tpu.memory_space<vmem>>, vector<1x64xf32>
    %c155 = arith.constant 155 : index
    %c0_11 = arith.constant 0 : index
    %9 = vector.load %arg3[%c155, %c0_11] : memref<160x64xf32, #tpu.memory_space<vmem>>, vector<1x64xf32>
    %c156 = arith.constant 156 : index
    %c0_12 = arith.constant 0 : index
    %10 = vector.load %arg3[%c156, %c0_12] : memref<160x64xf32, #tpu.memory_space<vmem>>, vector<1x2xf32>
    %cst = arith.constant dense<0.000000e+00> : vector<8x64xf32>
    %11 = tpu.matmul %0, %2, %cst {dimension_numbers = #tpu.dot_dimension_numbers<[1], [0], [0], [1], [0, 0, 1, 1], [], []>} : vector<8x16xf32>, vector<16x64xf32>, vector<8x64xf32> -> vector<8x64xf32>
    %12 = vector.broadcast %6 : vector<1x64xf32> to vector<8x64xf32>
    %13 = arith.addf %11, %12 : vector<8x64xf32>
    %cst_13 = arith.constant 0.000000e+00 : f32
    %14 = vector.broadcast %cst_13 : f32 to vector<8x64xf32>
    %15 = arith.maximumf %13, %14 : vector<8x64xf32>
    %cst_14 = arith.constant dense<0.000000e+00> : vector<8x64xf32>
    %16 = tpu.matmul %15, %3, %cst_14 {dimension_numbers = #tpu.dot_dimension_numbers<[1], [0], [0], [1], [0, 0, 1, 1], [], []>} : vector<8x64xf32>, vector<64x64xf32>, vector<8x64xf32> -> vector<8x64xf32>
    %cst_15 = arith.constant dense<0.000000e+00> : vector<8x64xf32>
    %17 = tpu.matmul %1, %4, %cst_15 {dimension_numbers = #tpu.dot_dimension_numbers<[1], [0], [0], [1], [0, 0, 1, 1], [], []>} : vector<8x4xf32>, vector<4x64xf32>, vector<8x64xf32> -> vector<8x64xf32>
    %18 = arith.addf %16, %17 : vector<8x64xf32>
    %19 = vector.broadcast %7 : vector<1x64xf32> to vector<8x64xf32>
    %20 = arith.addf %18, %19 : vector<8x64xf32>
    %cst_16 = arith.constant 0.000000e+00 : f32
    %21 = vector.broadcast %cst_16 : f32 to vector<8x64xf32>
    %22 = arith.maximumf %20, %21 : vector<8x64xf32>
    %cst_17 = arith.constant dense<0.000000e+00> : vector<8x64xf32>
    %23 = tpu.matmul %22, %5, %cst_17 {dimension_numbers = #tpu.dot_dimension_numbers<[1], [0], [0], [1], [0, 0, 1, 1], [], []>} : vector<8x64xf32>, vector<64x64xf32>, vector<8x64xf32> -> vector<8x64xf32>
    %24 = vector.broadcast %8 : vector<1x64xf32> to vector<8x64xf32>
    %25 = arith.addf %23, %24 : vector<8x64xf32>
    %cst_18 = arith.constant 0.000000e+00 : f32
    %26 = vector.broadcast %cst_18 : f32 to vector<8x64xf32>
    %27 = arith.maximumf %25, %26 : vector<8x64xf32>
    %28 = vector.broadcast %9 : vector<1x64xf32> to vector<8x64xf32>
    %29 = arith.mulf %27, %28 : vector<8x64xf32>
    %30 = vector.extract_strided_slice %29 {offsets = [0, 0], sizes = [8, 32], strides = [1, 1]} : vector<8x64xf32> to vector<8x32xf32>
    %cst_19 = arith.constant dense<0.000000e+00> : vector<8xf32>
    %31 = vector.multi_reduction <add>, %30, %cst_19 [1] : vector<8x32xf32> to vector<8xf32>
    %32 = vector.shape_cast %31 : vector<8xf32> to vector<8x1xf32>
    %33 = vector.extract_strided_slice %29 {offsets = [0, 32], sizes = [8, 32], strides = [1, 1]} : vector<8x64xf32> to vector<8x32xf32>
    %cst_20 = arith.constant dense<0.000000e+00> : vector<8xf32>
    %34 = vector.multi_reduction <add>, %33, %cst_20 [1] : vector<8x32xf32> to vector<8xf32>
    %35 = vector.shape_cast %34 : vector<8xf32> to vector<8x1xf32>
    %36 = tpu.concatenate %32, %35 in 1 : vector<8x1xf32>, vector<8x1xf32> -> vector<8x2xf32>
    %37 = vector.broadcast %10 : vector<1x2xf32> to vector<8x2xf32>
    %38 = arith.addf %36, %37 : vector<8x2xf32>
    %c0_21 = arith.constant 0 : index
    %c0_22 = arith.constant 0 : index
    %39 = vector.load %arg4[%c0_21, %c0_22] : memref<8x2xf32, #tpu.memory_space<vmem>>, vector<8x2xf32>
    tpu.vector_store %arg4[%c0_21, %c0_22], %38 {strides = array<i32>} : memref<8x2xf32, #tpu.memory_space<vmem>>, vector<8x2xf32>,
    return
  }
  func.func @transform_0(%arg0: i32) -> (i32, i32) {
    %c0_i32 = arith.constant 0 : i32
    %c0_i32_0 = arith.constant 0 : i32
    return %arg0, %c0_i32 : i32, i32
  }
  func.func @transform_1(%arg0: i32) -> (i32, i32) {
    %c0_i32 = arith.constant 0 : i32
    %c0_i32_0 = arith.constant 0 : i32
    return %arg0, %c0_i32 : i32, i32
  }
  func.func @transform_2(%arg0: i32) -> (i32, i32) {
    %c0_i32 = arith.constant 0 : i32
    %c0_i32_0 = arith.constant 0 : i32
    %c0_i32_1 = arith.constant 0 : i32
    return %c0_i32, %c0_i32_0 : i32, i32
  }
  func.func @transform_3(%arg0: i32) -> (i32, i32) {
    %c0_i32 = arith.constant 0 : i32
    %c0_i32_0 = arith.constant 0 : i32
    return %arg0, %c0_i32 : i32, i32
  }
}

</mosaic_0001>

<bundles_post_ra>
// kernel: tpu_custom_call.1
= control target key start
LH: loop header
LB: loop body
LE: loop exit
PB: predicated region body
PF: predicated region fallthrough
CT: control target
= control target key end

     0   :  { %v498_v0 = vmov 0.0|0.0   ;;  %vm499_vm0 = vmmov 0   ;;  %v500_v3 = vmov 0.0   ;;  %vm123_vm1 = vcmask 1043456   ;;  %s618_s2 = inlined_call_operand.vmem [shape: f32[160,64], index: 2, kind: input, shape index: {}]   ;;  %s619_s1 = inlined_call_operand.vmem [shape: f32[8,4], index: 1, kind: input, shape index: {}]   ;;  %s620_s0 = inlined_call_operand.vmem [shape: f32[8,16], index: 0, kind: input, shape index: {}]   ;;  %s621_s3 = inlined_call_operand.vmem [shape: f32[8,2], index: 3, kind: output, shape index: {}]  }
   0x1   :  { %467 = vmatprep.subr.bf16.mxu0 %v498_v0  ;;  %v16_v1 = vld [vmem:[%s618_s2] sm:$0xff]  ;;  %v17_v2 = vld [vmem:[%s618_s2 + $0x8] sm:$0xff]  ;;  %421 = vmatprep.mubr.msk.f32.mxu0 %vm499_vm0, %v500_v3  ;;  %vm119_vm2 = vcmask 31744   ;;  %v26_v5 = vld [vmem:[%s618_s2 + $0x50] sm:$0xf]  ;;  %vm44_vm3 = vcmask 130048  }
   0x2   :  { %v468_v4 = vpack.c.bf16 %v17_v2, %v16_v1  ;;  %424 = vmatprep.subr.mxu1 %v500_v3  ;;  %426 = vmatprep.mubr.msk.f32.mxu1 %vm499_vm0, %v500_v3  ;;  %v15_v6 = vld [vmem:[%s619_s1] sm:$0xff]  ;;  %v18_v7 = vld [vmem:[%s618_s2 + $0x10] sm:$0xff]  ;;  %v19_v8 = vld [vmem:[%s618_s2 + $0x18] sm:$0xff]  ;;  %vm197_vm4 = vcmask 523264   ;;  %vm360_vm5 = vcmask 261120   ;;  %vm371_vm6 = vcmask 7168  }
   0x3   :  { %425 = vmatpush3.msk.msra.mxu1 %vm123_vm1, %v26_v5  ;;  %v20_v9 = vld [vmem:[%s618_s2 + $0x20] sm:$0xff]  ;;  %v21_v10 = vld [vmem:[%s618_s2 + $0x28] sm:$0xff]  ;;  %v471_v12 = vpack.c.bf16 %v19_v8, %v18_v7  ;;  %v22_v14 = vld [vmem:[%s618_s2 + $0x30] sm:$0xff]  ;;  %vm378_vm7 = vcmask 15360  }
   0x4   :  { %469 = vmatpush3.bf16.msra.mxu0 %v468_v4  ;;  %v14_v11 = vld [vmem:[%s620_s0] sm:$0xff]  ;;  %427 = vmatmul.mubr.msk.f32.vlgmr.msra.gmra.mrb[0].mxu1 %vm119_vm2, %v15_v6  ;;  %v474_v13 = vpack.c.bf16 %v21_v10, %v20_v9  ;;  %v23_v15 = vld [vmem:[%s618_s2 + $0x38] sm:$0xff]  ;;  %v25_v18 = vld [vmem:[%s618_s2 + $0x48] sm:$0xff]  ;;  %s501_s0 = smov 96  }
   0x5   :  { %470 = vmatprep.subr.bf16.mxu1 %v498_v0  ;;  %445 = vmatprep.mubr.msk.f32.mxu1 %vm499_vm0, %v500_v3  ;;  %v477_v16 = vpack.c.bf16 %v23_v15, %v22_v14  ;;  %v24_v17 = vld [vmem:[%s618_s2 + $0x40] sm:$0xff]  ;;  %v27_v20 = vld [vmem:[%s618_s2 + $0x58] sm:$0xff]  ;;  %v29_v22 = vld [vmem:[%s618_s2 + $0x68] sm:$0xff] }
   0x6   :  { %472 = vmatpush3.bf16.msra.mxu1 %v471_v12  ;;  %482 = vmatprep.subr.bf16.mxu0 %v498_v0  ;;  %v480_v19 = vpack.c.bf16 %v25_v18, %v24_v17  ;;  %v28_v21 = vld [vmem:[%s618_s2 + $0x60] sm:$0xff]  ;;  %v30_v24 = vld [vmem:[%s618_s2 + $0x70] sm:$0xff]  ;;  %v384_v27 = vld [vmem:[%s618_s2 + $0x98] ss:$0 sm:$0xff] }
   0x7   :  { %422 = vmatmul.mubr.msk.f32.vlgmr.msra.gmra.mrb[0].mxu0 %vm44_vm3, %v14_v11  ;;  %473 = vmatprep.subr.bf16.mxu1 %v498_v0  ;;  %v483_v23 = vpack.c.bf16 %v28_v21, %v27_v20  ;;  %v486_v25 = vpack.c.bf16 %v30_v24, %v29_v22  ;;  %v31_v33 = vld [vmem:[%s618_s2 + $0x78] sm:$0xff]  ;;  %v32_v34 = vld [vmem:[%s618_s2 + $0x80] sm:$0xff]  ;;  %v33_v36 = vld [vmem:[%s618_s2 + $0x88] sm:$0xff] }
   0x8   :  { %464 = vmatprep.mubr.msk.f32.mxu0 %vm499_vm0, %v500_v3  ;;  %v489_v35 = vpack.c.bf16 %v32_v34, %v31_v33  ;;  %v34_v37 = vld [vmem:[%s618_s2 + $0x90] sm:$0xff]  ;;  %v389_v39 = vld [vmem:[%s618_s2 + $0x99] ss:$0 sm:$0xff]  ;;  %v390_v45 = vld [vmem:[%s618_s2 + $0x9a] ss:$0 sm:$0xff] }
   0x9   :  { %484 = vmatpush3.bf16.msra.mxu0 %v483_v23  ;;  %v492_v38 = vpack.c.bf16 %v34_v37, %v33_v36  ;;  %v392_v49 = vld [vmem:[%s618_s2 + $0x9b] ss:$0 sm:$0xff]  ;;  %v393_v55 = vld [vmem:[%s618_s2 + $0x9c] ss:$0 sm:$0xff] }
   0xa   :  { %475 = vmatpush3.bf16.msra.mxu1 %v474_v13  ;;  %485 = vmatprep.subr.bf16.mxu0 %v498_v0 }
   0xb   :  { %476 = vmatprep.subr.bf16.mxu1 %v498_v0 }
   0xd   :  { %487 = vmatpush3.bf16.msra.mxu0 %v486_v25 }
   0xe   :  { %478 = vmatpush3.bf16.msra.mxu1 %v477_v16  ;;  %488 = vmatprep.subr.bf16.mxu0 %v498_v0 }
   0xf   :  { %479 = vmatprep.subr.bf16.mxu1 %v498_v0 }
  0x11   :  { %490 = vmatpush3.bf16.msra.mxu0 %v489_v35 }
  0x12   :  { %481 = vmatpush3.bf16.msra.mxu1 %v480_v19  ;;  %491 = vmatprep.subr.bf16.mxu0 %v498_v0 }
  0x15   :  { %493 = vmatpush3.bf16.msra.mxu0 %v492_v38 }
  0xd7   :  { %v193_v26 = vpop.f32.mrb[0].mxu1 }
  0xd8   :  { %v428_v28 = vpop.f32.mrb[1].mxu1 }
  0xda   :  { %v114_v29 = vpop.f32.mrb[0].mxu0 }
  0xdb   :  { %v115_v30 = vadd.f32 %v384_v27, %v114_v29  ;;  %v423_v31 = vpop.f32.mrb[1].mxu0 }
  0xdd   :  { %v118_v32 = vmax.f32 %v115_v30, 0.0 }
  0xdf   :  { %446 = vmatmul.mubr.msk.f32.vlgmr.msra.gmra.mrb[2].mxu1 %vm197_vm4, %v118_v32 }
 0x1b2   :  { %v267_v40 = vpop.f32.mrb[2].mxu1 }
 0x1b3   :  { %v268_v41 = vadd.f32 %v267_v40, %v193_v26  ;;  %v447_v42 = vpop.f32.mrb[3].mxu1 }
 0x1b5   :  { %v275_v43 = vadd.f32 %v389_v39, %v268_v41 }
 0x1b7   :  { %v276_v44 = vmax.f32 %v275_v43, 0.0 }
 0x1b9   :  { %465 = vmatmul.mubr.msk.f32.vlgmr.msra.gmra.mrb[2].mxu0 %vm197_vm4, %v276_v44 }
 0x28c   :  { %v350_v46 = vpop.f32.mrb[2].mxu0 }
 0x28d   :  { %v351_v47 = vadd.f32 %v390_v45, %v350_v46  ;;  %v466_v48 = vpop.f32.mrb[3].mxu0 }
 0x28f   :  { %v354_v50 = vmax.f32 %v351_v47, 0.0 }
 0x291   :  { %v359_v51 = vmul.f32 %v392_v49, %v354_v50 }
 0x293   :  { %365 = vrot.lane.b32.xlu0 %v359_v51, %s501_s0  ;;  %v361_v52 = vsel %vm360_vm5, %v359_v51, 0.0 }
 0x2b2   :  { %362 = vadd.xlane.f32.xlu0 %v361_v52 }
 0x305   :  { %v366_v53 = vpop.permute.xlu0 %365 }
 0x306   :  { %v368_v54 = vsel %vm360_vm5, %v366_v53, 0.0 }
 0x307   :  { %369 = vadd.xlane.f32.xlu1 %v368_v54 }
 0x33f   :  { %v363_v56 = vpop.xlane.xlu0 %362 }
 0x394   :  { %v370_v57 = vpop.xlane.xlu1 %369 }
 0x395   :  { %v372_v58 = vsel %vm371_vm6, %v363_v56, %v370_v57 }
 0x396   :  { %v377_v59 = vadd.f32 %v393_v55, %v372_v58 }
 0x398   :  { %379 = vst.msk [vmem:[%s621_s3] sm:$0xff] %vm378_vm7, %v377_v59 }

</bundles_post_ra>
